<compile_context>
chip_gen: v7x
topology: tpu7x:2x2x1
jax: 0.10.0
libtpu: 0.0.40
codegen_flags: <defaults>
</compile_context>

<pallas_src>
import functools

import jax
import jax.numpy as jnp
from jax import lax
from jax.experimental import pallas as pl
from jax.experimental.pallas import tpu as pltpu


_SQRT_HALF = 0.7071067811865476
_SQRT_2_OVER_PI = 0.7978845608028654


def _round_up(x, m):
    return ((x + m - 1) // m) * m


def _pick_tile(dim, candidates):
    for c in candidates:
        if dim % c == 0:
            return c
    return 128  # dims are padded to multiples of 128, so this is always valid


def _gelu(x, approximate):
    if approximate:
        # tanh form runs on the (otherwise idle) EUP slot instead of a long VPU erf poly.
        return 0.5 * x * (1.0 + jnp.tanh(_SQRT_2_OVER_PI * (x + 0.044715 * x * x * x)))
    # PyTorch F.gelu default = exact erf-based GELU (kept in f32).
    return 0.5 * x * (1.0 + lax.erf(x * _SQRT_HALF))


# ---------------- Generation-aware VMEM budgets ----------------

def _tpu_vmem_capacity_bytes():
    """Physical VMEM per TensorCore; conservative if it can't be determined."""
    try:
        cap = getattr(pltpu.get_tpu_info(), "vmem_capacity_bytes", None)
        if cap:
            return int(cap)
    except Exception:
        pass
    try:
        kind = jax.devices()[0].device_kind.lower()
        if "v5" in kind or "v6" in kind:
            return 128 * 1024 * 1024
    except Exception:
        pass
    return 64 * 1024 * 1024  # v7x (64 MiB/TC) and unknown parts: stay conservative


@functools.lru_cache(maxsize=None)
def _vmem_budgets():
    """(vmem_limit_bytes, fused/resident budget, default row tile)."""
    cap = _tpu_vmem_capacity_bytes()
    limit = min(int(cap * 0.78), 100 * 1024 * 1024)   # ~100 MiB on v5e/v6e, ~48 MiB on v7x
    budget = min(int(cap * 0.60), 80 * 1024 * 1024)   # ~80 MiB on v5e/v6e, ~36 MiB on v7x
    default_tm = 512 if cap >= 128 * 1024 * 1024 else 256
    return limit, budget, default_tm


# ---------------- Single-buffer (pl.Buffered(1)) support probe ----------------

_SINGLE_BUFFER_OK = None


def _single_buffer_supported():
    """Probe once whether pipeline_mode=pl.Buffered(1) lowers on this install/part."""
    global _SINGLE_BUFFER_OK
    if _SINGLE_BUFFER_OK is not None:
        return _SINGLE_BUFFER_OK
    try:
        def _k(a_ref, c_ref, o_ref):
            o_ref[...] = a_ref[...] + c_ref[...]
        a = jnp.zeros((16, 128), jnp.float32)
        c = jnp.zeros((8, 128), jnp.float32)
        out = pl.pallas_call(
            _k,
            out_shape=jax.ShapeDtypeStruct((16, 128), jnp.float32),
            grid=(2,),
            in_specs=[pl.BlockSpec((8, 128), lambda i: (i, 0)),
                      pl.BlockSpec((8, 128), lambda i: (0, 0),
                                   pipeline_mode=pl.Buffered(1))],
            out_specs=pl.BlockSpec((8, 128), lambda i: (i, 0)),
        )(a, c)
        jax.block_until_ready(out)
        _SINGLE_BUFFER_OK = True
    except Exception:
        _SINGLE_BUFFER_OK = False
    return _SINGLE_BUFFER_OK


def _const2d_spec(shape, single_buffer):
    """BlockSpec for a grid-invariant (resident) parameter on a 1-D grid."""
    if single_buffer:
        # Constant index_map -> double buffering buys nothing; halve its VMEM footprint.
        return pl.BlockSpec(shape, lambda i: (0, 0), pipeline_mode=pl.Buffered(1))
    return pl.BlockSpec(shape, lambda i: (0, 0))


# ---------------- LayerNorm helper ----------------

def _layernorm_rows(h, gamma, beta, d_true, eps, padded_lanes_zero=True):
    """LayerNorm over the last axis of f32 `h`; only the first d_true lanes are real.

    padded_lanes_zero=True: padded lanes of h are exactly zero by construction
    (zero-padded weights/bias, GELU(0)=0, zero residual), so the mean needs no mask.
    """
    n = h.shape[-1]
    if d_true == n:
        mean = jnp.mean(h, axis=-1, keepdims=True)
        c = h - mean
        var = jnp.mean(c * c, axis=-1, keepdims=True)
    else:
        inv_d = jnp.float32(1.0 / d_true)
        mask = lax.broadcasted_iota(jnp.int32, h.shape, h.ndim - 1) < d_true
        hm = h if padded_lanes_zero else jnp.where(mask, h, 0.0)
        mean = jnp.sum(hm, axis=-1, keepdims=True) * inv_d
        c = jnp.where(mask, h - mean, 0.0)
        var = jnp.sum(c * c, axis=-1, keepdims=True) * inv_d
    return c * lax.rsqrt(var + eps) * gamma + beta


# ---------------- Fused whole-block kernel (primary path) ----------------

def _fc_block_fused_kernel(*refs, nlayers, normalise, d_true, eps, compute_dtype, approx):
    x_ref = refs[0]
    o_ref = refs[-1]
    p = refs[1:-1]  # w0, b0, w1, b1, ..., [gamma, beta]

    h = x_ref[...].astype(compute_dtype)     # MXU operand (bf16 by default)
    out = None                               # running f32 activation
    for li in range(nlayers):
        w = p[2 * li][...].astype(compute_dtype)
        b = p[2 * li + 1][...].astype(jnp.float32)
        y = jnp.dot(h, w, preferred_element_type=jnp.float32) + b
        y = _gelu(y, approx)
        if li > 0:
            y = y + out                       # residual from layer 1 onward (f32)
        out = y
        h = y.astype(compute_dtype)

    if normalise:
        gamma = p[2 * nlayers][...].astype(jnp.float32)
        beta = p[2 * nlayers + 1][...].astype(jnp.float32)
        out = _layernorm_rows(out, gamma, beta, d_true, eps)

    o_ref[...] = out.astype(o_ref.dtype)


def _fc_block_fused(x2d, weights, biases, gamma, beta, *, normalise, d_true, eps,
                    compute_dtype, approx, tm, vmem_limit, single_buffer):
    M, Kp = x2d.shape
    Np = weights[0].shape[1]
    nlayers = len(weights)

    in_specs = [pl.BlockSpec((tm, Kp), lambda i: (i, 0))]
    args = [x2d]
    for w, b in zip(weights, biases):
        in_specs.append(_const2d_spec(w.shape, single_buffer))
        in_specs.append(_const2d_spec(b.shape, single_buffer))
        args += [w, b]
    if normalise:
        in_specs.append(_const2d_spec(gamma.shape, single_buffer))
        in_specs.append(_const2d_spec(beta.shape, single_buffer))
        args += [gamma, beta]

    kernel = functools.partial(
        _fc_block_fused_kernel, nlayers=nlayers, normalise=normalise,
        d_true=d_true, eps=eps, compute_dtype=compute_dtype, approx=approx)

    return pl.pallas_call(
        kernel,
        out_shape=jax.ShapeDtypeStruct((M, Np), x2d.dtype),
        grid=(M // tm,),
        in_specs=in_specs,
        out_specs=pl.BlockSpec((tm, Np), lambda i: (i, 0)),
        compiler_params=pltpu.CompilerParams(
            dimension_semantics=("parallel",),
            vmem_limit_bytes=vmem_limit),
    )(*args)


# ---------------- Per-layer fused fallback (single layer weight resident) ----------------

def _linear_gelu_layer_kernel(*refs, residual, compute_dtype, approx):
    if residual:
        x_ref, w_ref, b_ref, r_ref, o_ref = refs
    else:
        x_ref, w_ref, b_ref, o_ref = refs
        r_ref = None
    y = jnp.dot(x_ref[...].astype(compute_dtype), w_ref[...].astype(compute_dtype),
                preferred_element_type=jnp.float32)
    y = _gelu(y + b_ref[...].astype(jnp.float32), approx)
    if residual:
        y = y + r_ref[...].astype(jnp.float32)
    o_ref[...] = y.astype(o_ref.dtype)


def _linear_gelu_layer(x2d, w, b, residual_in, *, compute_dtype, approx, tm,
                       vmem_limit, single_buffer):
    M, Kp = x2d.shape
    Np = w.shape[1]
    in_specs = [pl.BlockSpec((tm, Kp), lambda i: (i, 0)),
                _const2d_spec(w.shape, single_buffer),
                _const2d_spec(b.shape, single_buffer)]
    args = [x2d, w, b]
    if residual_in is not None:
        in_specs.append(pl.BlockSpec((tm, Np), lambda i: (i, 0)))
        args.append(residual_in)

    kernel = functools.partial(_linear_gelu_layer_kernel,
                               residual=residual_in is not None,
                               compute_dtype=compute_dtype, approx=approx)
    return pl.pallas_call(
        kernel,
        out_shape=jax.ShapeDtypeStruct((M, Np), x2d.dtype),
        grid=(M // tm,),
        in_specs=in_specs,
        out_specs=pl.BlockSpec((tm, Np), lambda i: (i, 0)),
        compiler_params=pltpu.CompilerParams(
            dimension_semantics=("parallel",),
            vmem_limit_bytes=vmem_limit),
    )(*args)


# ---------------- Per-layer M/N/K-tiled fallback (very large feature dims) ----------------

def _linear_gelu_tiled_kernel(*refs, residual, compute_dtype, approx):
    if residual:
        x_ref, w_ref, b_ref, r_ref, o_ref, acc_ref = refs
    else:
        x_ref, w_ref, b_ref, o_ref, acc_ref = refs
        r_ref = None
    k = pl.program_id(2)

    @pl.when(k == 0)
    def _():
        acc_ref[...] = jnp.zeros_like(acc_ref)

    acc_ref[...] += jnp.dot(x_ref[...].astype(compute_dtype),
                            w_ref[...].astype(compute_dtype),
                            preferred_element_type=jnp.float32)

    @pl.when(k == pl.num_programs(2) - 1)
    def _():
        y = _gelu(acc_ref[...] + b_ref[...].astype(jnp.float32), approx)
        if residual:
            y = y + r_ref[...].astype(jnp.float32)
        o_ref[...] = y.astype(o_ref.dtype)


def _linear_gelu_tiled(x2d, w, b, residual_in, *, compute_dtype, approx,
                       tm, tn, tk, vmem_limit):
    M, Kp = x2d.shape
    Np = w.shape[1]
    grid = (M // tm, Np // tn, Kp // tk)

    in_specs = [
        pl.BlockSpec((tm, tk), lambda i, j, k: (i, k)),
        pl.BlockSpec((tk, tn), lambda i, j, k: (k, j)),
        pl.BlockSpec((1, tn), lambda i, j, k: (0, j)),
    ]
    args = [x2d, w, b]
    if residual_in is not None:
        in_specs.append(pl.BlockSpec((tm, tn), lambda i, j, k: (i, j)))
        args.append(residual_in)

    kernel = functools.partial(_linear_gelu_tiled_kernel,
                               residual=residual_in is not None,
                               compute_dtype=compute_dtype, approx=approx)
    return pl.pallas_call(
        kernel,
        out_shape=jax.ShapeDtypeStruct((M, Np), x2d.dtype),
        grid=grid,
        in_specs=in_specs,
        out_specs=pl.BlockSpec((tm, tn), lambda i, j, k: (i, j)),
        scratch_shapes=[pltpu.VMEM((tm, tn), jnp.float32)],
        compiler_params=pltpu.CompilerParams(
            dimension_semantics=("parallel", "parallel", "arbitrary"),
            vmem_limit_bytes=vmem_limit),
    )(*args)


def _layernorm_kernel(x_ref, g_ref, b_ref, o_ref, *, d_true, eps):
    h = x_ref[...].astype(jnp.float32)
    y = _layernorm_rows(h, g_ref[...].astype(jnp.float32),
                        b_ref[...].astype(jnp.float32), d_true, eps)
    o_ref[...] = y.astype(o_ref.dtype)


def _layernorm_tiled(x2d, gamma, beta, *, d_true, eps, tm, vmem_limit):
    M, Np = x2d.shape
    kernel = functools.partial(_layernorm_kernel, d_true=d_true, eps=eps)
    return pl.pallas_call(
        kernel,
        out_shape=jax.ShapeDtypeStruct((M, Np), x2d.dtype),
        grid=(M // tm,),
        in_specs=[pl.BlockSpec((tm, Np), lambda i: (i, 0)),
                  pl.BlockSpec((1, Np), lambda i: (0, 0)),
                  pl.BlockSpec((1, Np), lambda i: (0, 0))],
        out_specs=pl.BlockSpec((tm, Np), lambda i: (i, 0)),
        compiler_params=pltpu.CompilerParams(
            dimension_semantics=("parallel",),
            vmem_limit_bytes=vmem_limit),
    )(x2d, gamma, beta)


# ---------------- Parameter init / prepare & top-level apply ----------------

def fc_block_init(key, in_dim, out_dim, nlayers, normalise=True):
    """Deterministic parameter init mimicking nn.Linear's U(-1/sqrt(fan_in), ...)."""
    params = {"weights": [], "biases": []}
    dims = [(in_dim, out_dim)] + [(out_dim, out_dim)] * (nlayers - 1)
    for li, (di, do) in enumerate(dims):
        kw, kb, key = jax.random.split(jax.random.fold_in(key, li), 3)
        bound = 1.0 / jnp.sqrt(di)
        # stored already transposed: (in, out)
        params["weights"].append(
            jax.random.uniform(kw, (di, do), jnp.float32, -bound, bound))
        params["biases"].append(
            jax.random.uniform(kb, (1, do), jnp.float32, -bound, bound))
    if normalise:
        params["ln_gamma"] = jnp.ones((1, out_dim), jnp.float32)
        params["ln_beta"] = jnp.zeros((1, out_dim), jnp.float32)
    return params


def fc_block_prepare(params, *, compute_dtype=jnp.bfloat16, normalise=True):
    """Pad (lane-dense, 128-multiples) + cast parameters ONCE, hoisted out of the step."""
    compute_dtype = jnp.dtype(compute_dtype)
    weights, biases = params["weights"], params["biases"]
    in_dim = weights[0].shape[0]
    out_dim = weights[0].shape[1]
    Kp = _round_up(in_dim, 128)
    Np = _round_up(out_dim, 128)
    ws, bs = [], []
    for li, (w, b) in enumerate(zip(weights, biases)):
        ki = Kp if li == 0 else Np
        ws.append(jnp.pad(w, ((0, ki - w.shape[0]), (0, Np - w.shape[1])))
                  .astype(compute_dtype))
        bs.append(jnp.pad(b, ((0, 0), (0, Np - b.shape[1]))).astype(jnp.float32))
    prep = {"_prepared": True, "weights": ws, "biases": bs,
            "in_dim": in_dim, "out_dim": out_dim, "compute_dtype": compute_dtype}
    if normalise:
        prep["ln_gamma"] = jnp.pad(params["ln_gamma"], ((0, 0), (0, Np - out_dim)))
        prep["ln_beta"] = jnp.pad(params["ln_beta"], ((0, 0), (0, Np - out_dim)))
    return prep


def fc_block_apply(params, x, *, normalise=True, eps=1e-5, compute_dtype=None,
                   tm=None, gelu_approx=False, force_path=None):
    """x: [batch, seq, in_dim] -> [batch, seq, out_dim].

    `params` may be raw (from fc_block_init) or pre-prepared via fc_block_prepare
    (preferred: the pad/cast then happens once, outside the step).
    force_path: None (auto) | "fused" | "layer" | "tiled".
    """
    if not params.get("_prepared", False):
        cd = jnp.bfloat16 if compute_dtype is None else compute_dtype
        params = fc_block_prepare(params, compute_dtype=cd, normalise=normalise)
    compute_dtype = jnp.dtype(params["compute_dtype"])
    ws, bs = params["weights"], params["biases"]
    in_dim, out_dim = params["in_dim"], params["out_dim"]
    Kp, Np = ws[0].shape
    gamma = params.get("ln_gamma") if normalise else None
    beta = params.get("ln_beta") if normalise else None

    B, S, Din = x.shape
    assert Din == in_dim

    vmem_limit, fused_budget, default_tm = _vmem_budgets()
    single_buffer = _single_buffer_supported()

    # Row tiling: large tiles (512 on 128-MiB-VMEM parts, 256 on v7x), but guarantee
    # >=2 row tiles when possible so the "parallel" M axis shards across both v7x TCs.
    M = B * S
    Mp8 = _round_up(M, 8)
    tm = default_tm if tm is None else tm
    tm = max(8, _round_up(min(tm, Mp8), 8))
    if Mp8 <= tm and Mp8 >= 16:
        tm = _round_up((Mp8 + 1) // 2, 8)
    Mp = _round_up(M, tm)

    x2d = x.reshape(M, Din)
    if Mp != M or Kp != Din:   # skip the pad entirely when already aligned
        x2d = jnp.pad(x2d, ((0, Mp - M), (0, Kp - Din)))

    # Path selection from VMEM estimates (params single-buffered when supported,
    # streamed activations double-buffered, plus in-kernel intermediates).
    x_isz = x.dtype.itemsize
    c_isz = compute_dtype.itemsize
    pbuf = 1 if single_buffer else 2

    param_bytes = sum(int(a.size) * a.dtype.itemsize for a in ws + bs)
    if normalise:
        param_bytes += int(gamma.size) * gamma.dtype.itemsize
        param_bytes += int(beta.size) * beta.dtype.itemsize
    fused_est = (pbuf * param_bytes
                 + 2 * tm * (Kp + Np) * x_isz                   # streamed in/out tiles
                 + tm * Np * (8 + c_isz) + tm * Kp * c_isz)     # in-kernel intermediates
    w_max_bytes = max(int(w.size) * w.dtype.itemsize for w in ws)
    layer_est = (pbuf * (w_max_bytes + Np * 4)
                 + 2 * tm * (Kp + 2 * Np) * x_isz
                 + 2 * tm * Np * 4 + tm * Kp * c_isz)

    if force_path is not None:
        path = force_path
    elif fused_est < fused_budget:
        path = "fused"
    elif layer_est < fused_budget:
        path = "layer"
    else:
        path = "tiled"

    if path == "fused":
        out2d = _fc_block_fused(x2d, ws, bs, gamma, beta, normalise=normalise,
                                d_true=out_dim, eps=eps, compute_dtype=compute_dtype,
                                approx=gelu_approx, tm=tm, vmem_limit=vmem_limit,
                                single_buffer=single_buffer)
    elif path == "layer":
        h = x2d
        for li, (w, b) in enumerate(zip(ws, bs)):
            h = _linear_gelu_layer(h, w, b, h if li > 0 else None,
                                   compute_dtype=compute_dtype, approx=gelu_approx,
                                   tm=tm, vmem_limit=vmem_limit,
                                   single_buffer=single_buffer)
        if normalise:
            h = _layernorm_tiled(h, gamma, beta, d_true=out_dim, eps=eps, tm=tm,
                                 vmem_limit=vmem_limit)
        out2d = h
    else:  # "tiled": M/N/K tiling; prefer 256+ wide N/K tiles (full MXU on v6e/v7x)
        tn = _pick_tile(Np, (512, 256, 128))
        h = x2d
        for li, (w, b) in enumerate(zip(ws, bs)):
            tk = _pick_tile(h.shape[1], (512, 256, 128))
            h = _linear_gelu_tiled(h, w, b, h if li > 0 else None,
                                   compute_dtype=compute_dtype, approx=gelu_approx,
                                   tm=tm, tn=tn, tk=tk, vmem_limit=vmem_limit)
        if normalise:
            h = _layernorm_tiled(h, gamma, beta, d_true=out_dim, eps=eps, tm=tm,
                                 vmem_limit=vmem_limit)
        out2d = h

    return out2d[:M, :out_dim].reshape(B, S, out_dim)


# ---------------- Pure-JAX reference (correctness check) ----------------

def fc_block_ref(params, x, *, normalise=True):
    for idx, (w, b) in enumerate(zip(params["weights"], params["biases"])):
        y = _gelu(jnp.dot(x, w) + b[0], False)
        x = y + x if idx > 0 else y
    if normalise:
        mean = jnp.mean(x, axis=-1, keepdims=True)
        var = jnp.mean((x - mean) ** 2, axis=-1, keepdims=True)
        x = (x - mean) * lax.rsqrt(var + 1e-5) * params["ln_gamma"][0] + params["ln_beta"][0]
    return x


if __name__ == "__main__":
    key = jax.random.PRNGKey(0)

    # --- demo shape: batch=2, seq=8, hidden=32, 3 layers, LayerNorm on ---
    B, S, in_dim, out_dim, nlayers = 2, 8, 32, 32, 3
    kx, kp = jax.random.split(key)
    x = jax.random.normal(kx, (B, S, in_dim), jnp.float32)
    params = fc_block_init(kp, in_dim, out_dim, nlayers, normalise=True)
    ref = fc_block_ref(params, x, normalise=True)

    # Default path: whole-block fused, bf16 MXU operands (f32 accumulation) -> loose check.
    out_bf16 = jax.block_until_ready(fc_block_apply(params, x, normalise=True))
    assert out_bf16.shape == (B, S, out_dim)
    assert jnp.allclose(out_bf16, ref, atol=1e-1, rtol=1e-1), "fused bf16 path mismatch"

    # Pre-prepared f32 params (pad/cast hoisted out of the step): tight check, fused path.
    prep32 = fc_block_prepare(params, compute_dtype=jnp.float32, normalise=True)
    out_f32 = jax.block_until_ready(fc_block_apply(prep32, x, normalise=True))
    assert jnp.allclose(out_f32, ref, atol=1e-5, rtol=1e-5), "fused f32 path mismatch"

    # Intermediate per-layer fused fallback (single layer weight resident): tight check.
    out_layer = jax.block_until_ready(
        fc_block_apply(prep32, x, normalise=True, force_path="layer"))
    assert jnp.allclose(out_layer, ref, atol=1e-5, rtol=1e-5), "per-layer path mismatch"

    # Last-resort M/N/K-tiled fallback on a ragged shape: tight-ish check.
    B2, S2, d2, nl2 = 3, 37, 96, 2
    k2x, k2p = jax.random.split(jax.random.fold_in(key, 7))
    x2 = jax.random.normal(k2x, (B2, S2, d2), jnp.float32)
    params2 = fc_block_init(k2p, d2, d2, nl2, normalise=True)
    prep2 = fc_block_prepare(params2, compute_dtype=jnp.float32, normalise=True)
    out2 = jax.block_until_ready(
        fc_block_apply(prep2, x2, normalise=True, force_path="tiled"))
    ref2 = fc_block_ref(params2, x2, normalise=True)
    assert out2.shape == (B2, S2, d2)
    assert jnp.allclose(out2, ref2, atol=1e-4, rtol=1e-4), "tiled path mismatch"

    # Optional tanh-approx GELU (EUP) path: loose check against exact-erf reference.
    out_tanh = jax.block_until_ready(
        fc_block_apply(prep32, x, normalise=True, gelu_approx=True))
    assert jnp.allclose(out_tanh, ref, atol=5e-2, rtol=5e-2), "tanh-GELU path mismatch"

    print("KERNEL_OK")
</pallas_src>

<mosaic_0001>
module attributes {stable_mosaic.version = 11 : i64} {
  func.func @_k(%arg0: i32, %arg1: memref<8x128xf32, #tpu.memory_space<vmem>>, %arg2: memref<8x128xf32, #tpu.memory_space<vmem>>, %arg3: memref<8x128xf32, #tpu.memory_space<vmem>>) attributes {dimension_semantics = [#tpu.dimension_semantics<arbitrary>], iteration_bounds = array<i64: 2>, scalar_prefetch = 0 : i64, scratch_operands = 0 : i64, tpu.core_type = #tpu.core_type<tc>, window_params = [{transform_indices = @transform_0, window_bounds = array<i64: 8, 128>}, {pipeline_mode = #tpu.pipeline_mode<synchronous>, transform_indices = @transform_1, window_bounds = array<i64: 8, 128>}, {transform_indices = @transform_2, window_bounds = array<i64: 8, 128>}]} {
    %c0 = arith.constant 0 : index
    %c0_0 = arith.constant 0 : index
    %0 = vector.load %arg1[%c0, %c0_0] : memref<8x128xf32, #tpu.memory_space<vmem>>, vector<8x128xf32>
    %c0_1 = arith.constant 0 : index
    %c0_2 = arith.constant 0 : index
    %1 = vector.load %arg2[%c0_1, %c0_2] : memref<8x128xf32, #tpu.memory_space<vmem>>, vector<8x128xf32>
    %2 = arith.addf %0, %1 : vector<8x128xf32>
    %c0_3 = arith.constant 0 : index
    %c0_4 = arith.constant 0 : index
    %3 = vector.load %arg3[%c0_3, %c0_4] : memref<8x128xf32, #tpu.memory_space<vmem>>, vector<8x128xf32>
    tpu.vector_store %arg3[%c0_3, %c0_4], %2 {strides = array<i32>} : memref<8x128xf32, #tpu.memory_space<vmem>>, vector<8x128xf32>,
    return
  }
  func.func @transform_0(%arg0: i32) -> (i32, i32) {
    %c0_i32 = arith.constant 0 : i32
    %c0_i32_0 = arith.constant 0 : i32
    return %arg0, %c0_i32 : i32, i32
  }
  func.func @transform_1(%arg0: i32) -> (i32, i32) {
    %c0_i32 = arith.constant 0 : i32
    %c0_i32_0 = arith.constant 0 : i32
    %c0_i32_1 = arith.constant 0 : i32
    return %c0_i32, %c0_i32_0 : i32, i32
  }
  func.func @transform_2(%arg0: i32) -> (i32, i32) {
    %c0_i32 = arith.constant 0 : i32
    %c0_i32_0 = arith.constant 0 : i32
    return %arg0, %c0_i32 : i32, i32
  }
}

module attributes {stable_mosaic.version = 11 : i64} {
  func.func @_fc_block_fused_kernel(%arg0: i32, %arg1: memref<8x128xf32, #tpu.memory_space<vmem>>, %arg2: memref<128x128xbf16, #tpu.memory_space<vmem>>, %arg3: memref<1x128xf32, #tpu.memory_space<vmem>>, %arg4: memref<128x128xbf16, #tpu.memory_space<vmem>>, %arg5: memref<1x128xf32, #tpu.memory_space<vmem>>, %arg6: memref<128x128xbf16, #tpu.memory_space<vmem>>, %arg7: memref<1x128xf32, #tpu.memory_space<vmem>>, %arg8: memref<1x128xf32, #tpu.memory_space<vmem>>, %arg9: memref<1x128xf32, #tpu.memory_space<vmem>>, %arg10: memref<8x128xf32, #tpu.memory_space<vmem>>) attributes {dimension_semantics = [#tpu.dimension_semantics<parallel>], iteration_bounds = array<i64: 2>, scalar_prefetch = 0 : i64, scratch_operands = 0 : i64, tpu.core_type = #tpu.core_type<tc>, window_params = [{transform_indices = @transform_0, window_bounds = array<i64: 8, 128>}, {pipeline_mode = #tpu.pipeline_mode<synchronous>, transform_indices = @transform_1, window_bounds = array<i64: 128, 128>}, {pipeline_mode = #tpu.pipeline_mode<synchronous>, transform_indices = @transform_2, window_bounds = array<i64: 1, 128>}, {pipeline_mode = #tpu.pipeline_mode<synchronous>, transform_indices = @transform_3, window_bounds = array<i64: 128, 128>}, {pipeline_mode = #tpu.pipeline_mode<synchronous>, transform_indices = @transform_4, window_bounds = array<i64: 1, 128>}, {pipeline_mode = #tpu.pipeline_mode<synchronous>, transform_indices = @transform_5, window_bounds = array<i64: 128, 128>}, {pipeline_mode = #tpu.pipeline_mode<synchronous>, transform_indices = @transform_6, window_bounds = array<i64: 1, 128>}, {pipeline_mode = #tpu.pipeline_mode<synchronous>, transform_indices = @transform_7, window_bounds = array<i64: 1, 128>}, {pipeline_mode = #tpu.pipeline_mode<synchronous>, transform_indices = @transform_8, window_bounds = array<i64: 1, 128>}, {transform_indices = @transform_9, window_bounds = array<i64: 8, 128>}]} {
    %c0 = arith.constant 0 : index
    %c0_0 = arith.constant 0 : index
    %0 = vector.load %arg1[%c0, %c0_0] : memref<8x128xf32, #tpu.memory_space<vmem>>, vector<8x128xf32>
    %1 = arith.truncf %0 : vector<8x128xf32> to vector<8x128xbf16>
    %c0_1 = arith.constant 0 : index
    %c0_2 = arith.constant 0 : index
    %2 = vector.load %arg2[%c0_1, %c0_2] : memref<128x128xbf16, #tpu.memory_space<vmem>>, vector<128x128xbf16>
    %c0_3 = arith.constant 0 : index
    %c0_4 = arith.constant 0 : index
    %3 = vector.load %arg3[%c0_3, %c0_4] : memref<1x128xf32, #tpu.memory_space<vmem>>, vector<1x128xf32>
    %cst = arith.constant dense<0.000000e+00> : vector<8x128xf32>
    %4 = tpu.matmul %1, %2, %cst {dimension_numbers = #tpu.dot_dimension_numbers<[1], [0], [0], [1], [0, 0, 1, 1], [], []>} : vector<8x128xbf16>, vector<128x128xbf16>, vector<8x128xf32> -> vector<8x128xf32>
    %5 = vector.broadcast %3 : vector<1x128xf32> to vector<8x128xf32>
    %6 = arith.addf %4, %5 : vector<8x128xf32>
    %cst_5 = arith.constant 5.000000e-01 : f32
    %7 = vector.broadcast %cst_5 : f32 to vector<8x128xf32>
    %8 = arith.mulf %7, %6 : vector<8x128xf32>
    %cst_6 = arith.constant 0.707106769 : f32
    %9 = vector.broadcast %cst_6 : f32 to vector<8x128xf32>
    %10 = arith.mulf %6, %9 : vector<8x128xf32>
    %11 = math.erf %10 : vector<8x128xf32>
    %cst_7 = arith.constant 1.000000e+00 : f32
    %12 = vector.broadcast %cst_7 : f32 to vector<8x128xf32>
    %13 = arith.addf %12, %11 : vector<8x128xf32>
    %14 = arith.mulf %8, %13 : vector<8x128xf32>
    %15 = arith.truncf %14 : vector<8x128xf32> to vector<8x128xbf16>
    %c0_8 = arith.constant 0 : index
    %c0_9 = arith.constant 0 : index
    %16 = vector.load %arg4[%c0_8, %c0_9] : memref<128x128xbf16, #tpu.memory_space<vmem>>, vector<128x128xbf16>
    %c0_10 = arith.constant 0 : index
    %c0_11 = arith.constant 0 : index
    %17 = vector.load %arg5[%c0_10, %c0_11] : memref<1x128xf32, #tpu.memory_space<vmem>>, vector<1x128xf32>
    %cst_12 = arith.constant dense<0.000000e+00> : vector<8x128xf32>
    %18 = tpu.matmul %15, %16, %cst_12 {dimension_numbers = #tpu.dot_dimension_numbers<[1], [0], [0], [1], [0, 0, 1, 1], [], []>} : vector<8x128xbf16>, vector<128x128xbf16>, vector<8x128xf32> -> vector<8x128xf32>
    %19 = vector.broadcast %17 : vector<1x128xf32> to vector<8x128xf32>
    %20 = arith.addf %18, %19 : vector<8x128xf32>
    %cst_13 = arith.constant 5.000000e-01 : f32
    %21 = vector.broadcast %cst_13 : f32 to vector<8x128xf32>
    %22 = arith.mulf %21, %20 : vector<8x128xf32>
    %cst_14 = arith.constant 0.707106769 : f32
    %23 = vector.broadcast %cst_14 : f32 to vector<8x128xf32>
    %24 = arith.mulf %20, %23 : vector<8x128xf32>
    %25 = math.erf %24 : vector<8x128xf32>
    %cst_15 = arith.constant 1.000000e+00 : f32
    %26 = vector.broadcast %cst_15 : f32 to vector<8x128xf32>
    %27 = arith.addf %26, %25 : vector<8x128xf32>
    %28 = arith.mulf %22, %27 : vector<8x128xf32>
    %29 = arith.addf %28, %14 : vector<8x128xf32>
    %30 = arith.truncf %29 : vector<8x128xf32> to vector<8x128xbf16>
    %c0_16 = arith.constant 0 : index
    %c0_17 = arith.constant 0 : index
    %31 = vector.load %arg6[%c0_16, %c0_17] : memref<128x128xbf16, #tpu.memory_space<vmem>>, vector<128x128xbf16>
    %c0_18 = arith.constant 0 : index
    %c0_19 = arith.constant 0 : index
    %32 = vector.load %arg7[%c0_18, %c0_19] : memref<1x128xf32, #tpu.memory_space<vmem>>, vector<1x128xf32>
    %cst_20 = arith.constant dense<0.000000e+00> : vector<8x128xf32>
    %33 = tpu.matmul %30, %31, %cst_20 {dimension_numbers = #tpu.dot_dimension_numbers<[1], [0], [0], [1], [0, 0, 1, 1], [], []>} : vector<8x128xbf16>, vector<128x128xbf16>, vector<8x128xf32> -> vector<8x128xf32>
    %34 = vector.broadcast %32 : vector<1x128xf32> to vector<8x128xf32>
    %35 = arith.addf %33, %34 : vector<8x128xf32>
    %cst_21 = arith.constant 5.000000e-01 : f32
    %36 = vector.broadcast %cst_21 : f32 to vector<8x128xf32>
    %37 = arith.mulf %36, %35 : vector<8x128xf32>
    %cst_22 = arith.constant 0.707106769 : f32
    %38 = vector.broadcast %cst_22 : f32 to vector<8x128xf32>
    %39 = arith.mulf %35, %38 : vector<8x128xf32>
    %40 = math.erf %39 : vector<8x128xf32>
    %cst_23 = arith.constant 1.000000e+00 : f32
    %41 = vector.broadcast %cst_23 : f32 to vector<8x128xf32>
    %42 = arith.addf %41, %40 : vector<8x128xf32>
    %43 = arith.mulf %37, %42 : vector<8x128xf32>
    %44 = arith.addf %43, %29 : vector<8x128xf32>
    %c0_24 = arith.constant 0 : index
    %c0_25 = arith.constant 0 : index
    %45 = vector.load %arg8[%c0_24, %c0_25] : memref<1x128xf32, #tpu.memory_space<vmem>>, vector<1x128xf32>
    %c0_26 = arith.constant 0 : index
    %c0_27 = arith.constant 0 : index
    %46 = vector.load %arg9[%c0_26, %c0_27] : memref<1x128xf32, #tpu.memory_space<vmem>>, vector<1x128xf32>
    %47 = tpu.iota {dimensions = array<i32: 1>} : vector<8x128xi32>
    %c32_i32 = arith.constant 32 : i32
    %48 = vector.broadcast %c32_i32 : i32 to vector<8x128xi32>
    %49 = arith.cmpi slt, %47, %48 : vector<8x128xi32>
    %cst_28 = arith.constant dense<0.000000e+00> : vector<8xf32>
    %50 = vector.multi_reduction <add>, %44, %cst_28 [1] : vector<8x128xf32> to vector<8xf32>
    %51 = vector.shape_cast %50 : vector<8xf32> to vector<8x1xf32>
    %cst_29 = arith.constant 3.125000e-02 : f32
    %52 = vector.broadcast %cst_29 : f32 to vector<8x1xf32>
    %53 = arith.mulf %51, %52 : vector<8x1xf32>
    %54 = vector.broadcast %53 : vector<8x1xf32> to vector<8x128xf32>
    %55 = arith.subf %44, %54 : vector<8x128xf32>
    %cst_30 = arith.constant 0.000000e+00 : f32
    %56 = vector.broadcast %cst_30 : f32 to vector<8x128xf32>
    %57 = arith.select %49, %55, %56 : vector<8x128xi1>, vector<8x128xf32>
    %58 = arith.mulf %57, %57 : vector<8x128xf32>
    %cst_31 = arith.constant dense<0.000000e+00> : vector<8xf32>
    %59 = vector.multi_reduction <add>, %58, %cst_31 [1] : vector<8x128xf32> to vector<8xf32>
    %60 = vector.shape_cast %59 : vector<8xf32> to vector<8x1xf32>
    %cst_32 = arith.constant 3.125000e-02 : f32
    %61 = vector.broadcast %cst_32 : f32 to vector<8x1xf32>
    %62 = arith.mulf %60, %61 : vector<8x1xf32>
    %cst_33 = arith.constant 9.99999974E-6 : f32
    %63 = vector.broadcast %cst_33 : f32 to vector<8x1xf32>
    %64 = arith.addf %62, %63 : vector<8x1xf32>
    %65 = math.rsqrt %64 : vector<8x1xf32>
    %66 = vector.broadcast %65 : vector<8x1xf32> to vector<8x128xf32>
    %67 = arith.mulf %57, %66 : vector<8x128xf32>
    %68 = vector.broadcast %45 : vector<1x128xf32> to vector<8x128xf32>
    %69 = arith.mulf %67, %68 : vector<8x128xf32>
    %70 = vector.broadcast %46 : vector<1x128xf32> to vector<8x128xf32>
    %71 = arith.addf %69, %70 : vector<8x128xf32>
    %c0_34 = arith.constant 0 : index
    %c0_35 = arith.constant 0 : index
    %72 = vector.load %arg10[%c0_34, %c0_35] : memref<8x128xf32, #tpu.memory_space<vmem>>, vector<8x128xf32>
    tpu.vector_store %arg10[%c0_34, %c0_35], %71 {strides = array<i32>} : memref<8x128xf32, #tpu.memory_space<vmem>>, vector<8x128xf32>,
    return
  }
  func.func @transform_0(%arg0: i32) -> (i32, i32) {
    %c0_i32 = arith.constant 0 : i32
    %c0_i32_0 = arith.constant 0 : i32
    return %arg0, %c0_i32 : i32, i32
  }
  func.func @transform_1(%arg0: i32) -> (i32, i32) {
    %c0_i32 = arith.constant 0 : i32
    %c0_i32_0 = arith.constant 0 : i32
    %c0_i32_1 = arith.constant 0 : i32
    return %c0_i32, %c0_i32_0 : i32, i32
  }
  func.func @transform_2(%arg0: i32) -> (i32, i32) {
    %c0_i32 = arith.constant 0 : i32
    %c0_i32_0 = arith.constant 0 : i32
    %c0_i32_1 = arith.constant 0 : i32
    return %c0_i32, %c0_i32_0 : i32, i32
  }
  func.func @transform_3(%arg0: i32) -> (i32, i32) {
    %c0_i32 = arith.constant 0 : i32
    %c0_i32_0 = arith.constant 0 : i32
    %c0_i32_1 = arith.constant 0 : i32
    return %c0_i32, %c0_i32_0 : i32, i32
  }
  func.func @transform_4(%arg0: i32) -> (i32, i32) {
    %c0_i32 = arith.constant 0 : i32
    %c0_i32_0 = arith.constant 0 : i32
    %c0_i32_1 = arith.constant 0 : i32
    return %c0_i32, %c0_i32_0 : i32, i32
  }
  func.func @transform_5(%arg0: i32) -> (i32, i32) {
    %c0_i32 = arith.constant 0 : i32
    %c0_i32_0 = arith.constant 0 : i32
    %c0_i32_1 = arith.constant 0 : i32
    return %c0_i32, %c0_i32_0 : i32, i32
  }
  func.func @transform_6(%arg0: i32) -> (i32, i32) {
    %c0_i32 = arith.constant 0 : i32
    %c0_i32_0 = arith.constant 0 : i32
    %c0_i32_1 = arith.constant 0 : i32
    return %c0_i32, %c0_i32_0 : i32, i32
  }
  func.func @transform_7(%arg0: i32) -> (i32, i32) {
    %c0_i32 = arith.constant 0 : i32
    %c0_i32_0 = arith.constant 0 : i32
    %c0_i32_1 = arith.constant 0 : i32
    return %c0_i32, %c0_i32_0 : i32, i32
  }
  func.func @transform_8(%arg0: i32) -> (i32, i32) {
    %c0_i32 = arith.constant 0 : i32
    %c0_i32_0 = arith.constant 0 : i32
    %c0_i32_1 = arith.constant 0 : i32
    return %c0_i32, %c0_i32_0 : i32, i32
  }
  func.func @transform_9(%arg0: i32) -> (i32, i32) {
    %c0_i32 = arith.constant 0 : i32
    %c0_i32_0 = arith.constant 0 : i32
    return %arg0, %c0_i32 : i32, i32
  }
}

</mosaic_0001>

<bundles_post_ra>
// kernel: tpu_custom_call.1
= control target key start
LH: loop header
LB: loop body
LE: loop exit
PB: predicated region body
PF: predicated region fallthrough
CT: control target
= control target key end

     0   :  { %7 = vsyncpa [#allocation3], 0  ;;  %s690_s0 = inlined_call_operand.hbm [shape: f32[16,128], index: 0, kind: input, shape index: {}]   ;;  %s691_s1 = inlined_call_operand.hbm [shape: f32[8,128], index: 1, kind: input, shape index: {}]   ;;  %s692_s2 = inlined_call_operand.hbm [shape: f32[16,128], index: 2, kind: output, shape index: {}]  }
   0x1   :  { %9 = vsyncpa [#allocation3 + $0x1], 0 }
   0x2   :  { %10 = vsyncpa [#allocation6], 0 }
   0x3   :  { %11 = vsyncpa [#allocation4], 0 }
   0x4   :  { %13 = vsyncpa [#allocation4 + $0x1], 0  ;;  %s489_s9 = smov 0   ;;  %s491_s10 = smov 0  }
   0x5   :  { %s493_s11 = smov 0   ;;  %s495_s12 = smov 0  }
   0x6 LB: > { %s510_s13 = sadd.s32 4294967295, %s469_s12   ;;  %s270_s14 = sadd.s32 4294967294, %s469_s12   ;;  %s469_s12 = sphi %s495_s12, %s716_s12   ;;  %s465_s11 = sphi %s493_s11, %s715_s11   ;;  %s461_s10 = sphi %s491_s10, %s714_s10   ;;  %s457_s9 = sphi %s489_s9, %s713_s9  }
   0x7   : > { %p39_p0 = scmp.ne.s32.totalorder %s461_s10, %s457_s9  ;;  %p693_p1 = scmp.eq.s32.totalorder %s510_s13, 0 }
   0x8   : > { %p90_p3 = scmp.eq.s32.totalorder %s270_s14, 1  ;;  %p271_p5 = scmp.ge.s32.totalorder %s469_s12, 1 }
   0x9   : > { %p519_p4 = por %p693_p1, %p39_p0  ;;  %p97_p7 = scmp.lt.s32.totalorder %s469_s12, 3 }
   0xa   : > { %p524_p6 = por %p90_p3, %p39_p0  ;;  %s471_s18 = smov [#allocation5]  }
   0xb   : > { %s696_s15 = scalar_select %p519_p4, 1, 0 }
   0xc   : > { %s697_s16 = scalar_select %p524_p6, 1, 0 }
   0xd   : > { %p529_p8 = pnand %p271_p5, %p97_p7  ;;  %s110_s19 = sshll.u32 %s471_s18, 4  ;;  %s111_s19 = int_to_ptr.vmem [resolvable:$true] %s110_s19 }
   0xe   : > { %s537_s20 = sadd.s32 1, %s469_s12   ;;  %s26_s24 = sadd.s32 1, %s465_s11 }
   0xf   : > { %s698_s17 = scalar_select %p529_p8, 1, 0 }
  0x10   : > { %p292_p10 = pneg %p529_p8  ;;  %s23_s22 = ssub.s32 %s469_s12, %s537_s20 }
  0x11   : > { %p547_p12 = scmp.eq.s32.totalorder %s23_s22, 0  ;;  %s341_s27 = scalar_lea.hbm %s691_s1, 128 }
  0x12   : > { %p541_p11 = pnand %p292_p10, %p693_p1  ;;  %p342_p0 = scmp.ne.s32.totalorder %s691_s1, %s341_s27 }
  0x13   : > { %s700_s23 = scalar_select %p547_p12, 1, 0 }
  0x14   : > { %p343_p3 = pneg %p541_p11  ;;  %p348_p10 = scmp.lt.u32.totalorder %s341_s27, %s691_s1 }
  0x16   : > { %p344_p5 = pnand %p343_p3, %p342_p0 }
  0x18   : > { %p345_p7 = pneg %p344_p5 }
  0x1a   : > { %p350_p9 = pnand %p348_p10, %p345_p7 }
  0x1c   : > { %353 = shalt.err (!%p350_p9)
}
  0x1d   : > { %s354_s4 = scalar_lea.vmem %s111_s19, 128  ;;  %p362_p6 = scmp.lt.s32.totalorder %s111_s19, %s111_s19 }
  0x1e   : > { %p355_p1 = scmp.ne.s32.totalorder %s111_s19, %s354_s4  ;;  %p363_p4 = scmp.lt.s32.totalorder %s354_s4, %s354_s4 }
  0x20   : > { %p357_p2 = pnand %p355_p1, %p343_p3  ;;  %p364_p8 = por %p363_p4, %p362_p6 }
  0x22   : > { %p358_p13 = pneg %p357_p2 }
  0x24   : > { %p365_p12 = pnand %p364_p8, %p358_p13 }
  0x26   : > { %368 = shalt.err (!%p365_p12)
}
  0x27   : > { %295 = dma.hbm_to_vmem [thread:$0]  (!%p541_p11), %s691_s1, 128, %s111_s19, [#allocation6]  }
  0x28   : > { %p701_p1 = scmp.ne.s32.totalorder %s700_s23, 0  ;;  %p34_p2 = scmp.eq.s32.totalorder %s469_s12, 0 }
  0x29   : > { %p702_p4 = scmp.ne.s32.totalorder %s465_s11, %s461_s10  ;;  %p703_p6 = scmp.eq.s32.totalorder %s510_s13, 1 }
  0x2a   : > { %s573_s7 = scalar_select %p701_p1, %s465_s11, %s26_s24  }
  0x2b   : > { %p581_p8 = por %p703_p6, %p702_p4  ;;  %p305_p9 = scmp.lt.s32.totalorder %s469_s12, 2 }
  0x2c   : > { %s121_s14 = sand.u32 1, %s465_s11   ;;  %p705_p12 = pmov %p702_p4 }
  0x2d   : > { %s274_s18 = sshll.u32 %s121_s14, 3  ;;  %s275_s21 = sshll.u32 %s469_s12, 7 }
  0x2e   : > { %p35_p13 = por %p34_p2, %p705_p12  ;;  %s594_s19 = scalar_lea.hbm %s690_s0, %s275_s21 }
  0x2f   : > { %s125_s23 = scalar_lea.vmem [#allocation2], %s274_s18  ;;  %s122_s27 = scalar_lea.sflag [#allocation3], %s121_s14 }
  0x30   : > { %s132_s24 = sshll.u32 %s125_s23, 4  ;;  %p596_p11 = pnand %p305_p9, %p35_p13  ;;  %s600_s24 = int_to_ptr.vmem [resolvable:$true] %s132_s24 }
  0x31   : > { %s369_s28 = scalar_lea.hbm %s594_s19, 128  ;;  %s374_s3 = scalar_lea.hbm %s690_s0, 256 }
  0x32   : > { %p370_p0 = scmp.ne.s32.totalorder %s594_s19, %s369_s28  ;;  %p371_p3 = pneg %p596_p11 }
  0x33   : > { %p375_p10 = scmp.lt.u32.totalorder %s594_s19, %s690_s0  ;;  %p376_p1 = scmp.lt.u32.totalorder %s374_s3, %s369_s28 }
  0x34   : > { %p372_p5 = pnand %p371_p3, %p370_p0  ;;  %p378_p4 = scmp.lt.u32.totalorder %s369_s28, %s594_s19 }
  0x35   : > { %p377_p2 = por %p376_p1, %p375_p10 }
  0x36   : > { %p373_p7 = pneg %p372_p5 }
  0x37   : > { %p379_p6 = por %p378_p4, %p377_p2 }
  0x39   : > { %p380_p9 = pnand %p379_p6, %p373_p7 }
  0x3b   : > { %383 = shalt.err (!%p380_p9)
}
  0x3c   : > { %s384_s6 = scalar_lea.vmem %s600_s24, 128  ;;  %s472_s14 = smov [#allocation2]  }
  0x3d   : > { %p385_p12 = scmp.ne.s32.totalorder %s600_s24, %s384_s6  ;;  %s389_s18 = sshll.u32 %s472_s14, 4  ;;  %s390_s18 = int_to_ptr.vmem [resolvable:$false] %s389_s18 }
  0x3e   : > { %s391_s21 = scalar_lea.vmem %s390_s18, 256  ;;  %p392_p5 = scmp.lt.s32.totalorder %s600_s24, %s390_s18 }
  0x3f   : > { %p387_p13 = pnand %p385_p12, %p371_p3  ;;  %p393_p10 = scmp.lt.s32.totalorder %s391_s21, %s384_s6 }
  0x41   : > { %p388_p0 = pneg %p387_p13  ;;  %p394_p1 = por %p393_p10, %p392_p5 }
  0x43   : > { %p395_p2 = pnand %p394_p1, %p388_p0 }
  0x45   : > { %398 = shalt.err (!%p395_p2)
}
  0x46   : > { %299 = dma.hbm_to_vmem [thread:$0]  (!%p596_p11), %s594_s19, 128, %s600_s24, %s122_s27  }
  0x47   : > { %p707_p7 = scmp.ne.s32.totalorder %s698_s17, 0 }
  0x48   : > { %s630_s22 = sand.u32 (!%p707_p7), 1, %s461_s10   ;;  %p708_p3 = scmp.ne.s32.totalorder (!%p707_p7), %s696_s15, 0 }
  0x49   : > { %141 = sbr.rel (%p707_p7) target bundleno = 109 (0x6d), region = 28  ;;  %s277_s25 = sshll.u32 (!%p707_p7), %s630_s22, 3 }
  0x4a   : > { %s144_s23 = scalar_lea.sflag (!%p707_p7), [#allocation3], %s630_s22  ;;  %s147_s28 = scalar_lea.vmem (!%p707_p7), [#allocation2], %s277_s25 }
  0x50   : > { %444 = dma.done.wait (%p708_p3), %s144_s23, 128  }
  0x51   : > { %446 = vsyncadd (%p708_p3), %s144_s23, 4294967168  ;;  %p709_p4 = scmp.eq.s32.totalorder %s510_s13, 0 }
  0x53   : > { %448 = dma.done.wait (%p709_p4), [#allocation6], 128   ;;  %p710_p11 = pmov %p709_p4 }
  0x54   : > { %s171_s17 = scalar_lea.vmem [#allocation7], %s277_s25  ;;  %s281_s24 = sshll.u32 %s510_s13, 7  ;;  %v172_v0 = vld [vmem:[%s147_s28] sm:$0xff]  ;;  %v173_v1 = vld [vmem:[#allocation5] sm:$0xff] }
  0x55   : > { %450 = vsyncadd (%p710_p11), [#allocation6], 4294967168  ;;  %s190_s19 = sshll.u32 %s171_s17, 4  ;;  %v174_v2 = vadd.f32 %v173_v1, %v172_v0  ;;  %s648_s27 = scalar_lea.hbm %s692_s2, %s281_s24  ;;  %s643_s19 = int_to_ptr.vmem [resolvable:$true] %s190_s19 }
  0x56   : > { %s177_s29 = scalar_lea.sflag [#allocation4], %s630_s22  ;;  %s399_s30 = scalar_lea.vmem %s643_s19, 128 }
  0x57   : > { %175 = vst [vmem:[%s171_s17] sm:$0xff] %v174_v2  ;;  %p400_p6 = scmp.ne.s32.totalorder %s643_s19, %s399_s30  ;;  %s473_s13 = smov [#allocation7]  }
  0x58   : > { %s403_s3 = sshll.u32 %s473_s13, 4  ;;  %s404_s3 = int_to_ptr.vmem [resolvable:$false] %s403_s3 }
  0x59   : > { %p401_p9 = pnand %p400_p6, %p581_p8  ;;  %s405_s4 = scalar_lea.vmem %s404_s3, 256 }
  0x5a   : > { %p406_p13 = scmp.lt.s32.totalorder %s643_s19, %s404_s3  ;;  %p407_p0 = scmp.lt.s32.totalorder %s405_s4, %s399_s30 }
  0x5b   : > { %p402_p12 = pneg %p401_p9 }
  0x5c   : > { %p408_p5 = por %p407_p0, %p406_p13 }
  0x5e   : > { %p409_p10 = pnand %p408_p5, %p402_p12 }
  0x60   : > { %412 = shalt.err (!%p409_p10)
}
  0x61   : > { %s413_s5 = scalar_lea.hbm %s648_s27, 128  ;;  %s417_s18 = scalar_lea.hbm %s692_s2, 256 }
  0x62   : > { %p414_p1 = scmp.ne.s32.totalorder %s648_s27, %s413_s5  ;;  %p418_p3 = scmp.lt.u32.totalorder %s648_s27, %s692_s2 }
  0x63   : > { %p419_p4 = scmp.lt.u32.totalorder %s417_s18, %s413_s5  ;;  %p421_p6 = scmp.lt.u32.totalorder %s413_s5, %s648_s27 }
  0x64   : > { %p415_p2 = pnand %p414_p1, %p581_p8 }
  0x65   : > { %p420_p11 = por %p419_p4, %p418_p3 }
  0x66   : > { %p416_p7 = pneg %p415_p2 }
  0x67   : > { %p422_p9 = por %p421_p6, %p420_p11 }
  0x69   : > { %p423_p12 = pnand %p422_p9, %p416_p7 }
  0x6b   : > { %426 = shalt.err (!%p423_p12)
}
  0x6c   : > { %290 = dma.vmem_to_hbm [thread:$0]  (%p581_p8), %s643_s19, 128, %s648_s27, %s177_s29  }
  0x6d PF: > { %s202_s25 = sand.u32 1, %s457_s9   ;;  %p711_p13 = scmp.ne.s32.totalorder %s697_s16, 0 }
  0x6e   : > { %p712_p0 = scmp.ge.s32.totalorder %s469_s12, 2  ;;  %s203_s23 = scalar_lea.sflag [#allocation4], %s202_s25 }
  0x70   : > { %p301_p5 = pnand %p712_p0, %p711_p13 }
  0x72   : > { %452 = dma.done.wait (!%p301_p5), %s203_s23, 128  }
  0x73   : > { %454 = vsyncadd (!%p301_p5), %s203_s23, 4294967168  ;;  %p16_p10 = scmp.ge.s32.totalorder %s537_s20, 4   ;;  %s713_s9 = smov %s461_s10 }
  0x74   : > { %s714_s10 = smov %s465_s11  ;;  %s715_s11 = smov %s573_s7 }
  0x75   : > { %s716_s12 = smov %s537_s20  ;;  %18 = sbr.rel (!%p16_p10) target bundleno = 6 (0x6), region = 77 }
  0x7c   :  { %208 = vsyncpa [#allocation3], 1 }
  0x7d   :  { %210 = vsyncpa [#allocation3 + $0x1], 1 }
  0x7e   :  { %211 = vsyncpa [#allocation6], 1 }
  0x7f   :  { %212 = vsyncpa [#allocation4], 1 }
  0x80   :  { %214 = vsyncpa [#allocation4 + $0x1], 1 }

// kernel: tpu_custom_call.1
= control target key start
LH: loop header
LB: loop body
LE: loop exit
PB: predicated region body
PF: predicated region fallthrough
CT: control target
= control target key end

     0   :  { %s1703_s0 = inlined_call_operand.hbm [shape: f32[16,128], index: 0, kind: input, shape index: {}]   ;;  %s1704_s1 = inlined_call_operand.hbm [shape: bf16[128,128], index: 1, kind: input, shape index: {}]   ;;  %s1705_s2 = inlined_call_operand.vmem [shape: f32[1,128], index: 2, kind: input, shape index: {}]   ;;  %s1706_s3 = inlined_call_operand.hbm [shape: bf16[128,128], index: 3, kind: input, shape index: {}]   ;;  %s1707_s4 = inlined_call_operand.vmem [shape: f32[1,128], index: 4, kind: input, shape index: {}]   ;;  %s1708_s5 = inlined_call_operand.hbm [shape: bf16[128,128], index: 5, kind: input, shape index: {}]   ;;  %s1709_s6 = inlined_call_operand.vmem [shape: f32[1,128], index: 6, kind: input, shape index: {}]   ;;  %s1710_s7 = inlined_call_operand.vmem [shape: f32[1,128], index: 7, kind: input, shape index: {}]   ;;  %s1711_s8 = inlined_call_operand.vmem [shape: f32[1,128], index: 8, kind: input, shape index: {}]   ;;  %s1712_s9 = inlined_call_operand.hbm [shape: f32[16,128], index: 9, kind: output, shape index: {}]  }
   0x1   :  { %1719 = sst [smem:[#allocation17_spill]] %s1712_s9 }
   0x2   :  { %14 = vsyncpa [#allocation3], 0 }
   0x3   :  { %16 = vsyncpa [#allocation3 + $0x1], 0 }
   0x4   :  { %17 = vsyncpa [#allocation6], 0 }
   0x5   :  { %18 = vsyncpa [#allocation9], 0 }
   0x6   :  { %19 = vsyncpa [#allocation4], 0 }
   0x7   :  { %21 = vsyncpa [#allocation4 + $0x1], 0  ;;  %s1388_s30 = smov 0   ;;  %s1390_s10 = smov 0  }
   0x8   :  { %s1392_s11 = smov 0   ;;  %s1394_s12 = smov 0  }
   0x9 LB: > { %1720 = sst [smem:[#allocation15_spill]] %s1315_s30  ;;  %s1409_s13 = sadd.s32 4294967295, %s1327_s12   ;;  %s1327_s12 = sphi %s1394_s12, %s1744_s12   ;;  %s1323_s11 = sphi %s1392_s11, %s1743_s11   ;;  %s1319_s10 = sphi %s1390_s10, %s1742_s10   ;;  %s1315_s30 = sphi %s1388_s30, %s1741_s30  }
   0xa   : > { %s892_s14 = sadd.s32 4294967294, %s1327_s12   ;;  %p47_p0 = scmp.ne.s32.totalorder %s1319_s10, %s1315_s30 }
   0xb   : > { %p1713_p1 = scmp.eq.s32.totalorder %s1409_s13, 0  ;;  %p245_p3 = scmp.eq.s32.totalorder %s892_s14, 1 }
   0xc   : > { %p893_p5 = scmp.ge.s32.totalorder %s1327_s12, 1  ;;  %p252_p7 = scmp.lt.s32.totalorder %s1327_s12, 3 }
   0xd   : > { %p1418_p4 = por %p1713_p1, %p47_p0  ;;  %p1423_p6 = por %p245_p3, %p47_p0 }
   0xe   : > { %p1428_p8 = pnand %p893_p5, %p252_p7  ;;  %s1329_s18 = smov [#allocation5]  }
   0xf   : > { %s1721_s15 = scalar_select %p1418_p4, 1, 0 }
  0x10   : > { %s1722_s16 = scalar_select %p1423_p6, 1, 0 }
  0x11   : > { %s1724_s17 = scalar_select %p1428_p8, 1, 0 }
  0x12   : > { %1723 = sst [smem:[#allocation16_spill]] %s1722_s16  ;;  %s264_s19 = sshll.u32 %s1329_s18, 4  ;;  %s1432_s19 = int_to_ptr.vmem [resolvable:$true] %s264_s19 }
  0x13   : > { %p1042_p9 = pneg %p1428_p8  ;;  %s1330_s21 = smov [#allocation7]  }
  0x14   : > { %s280_s22 = sshll.u32 %s1330_s21, 4  ;;  %s1331_s23 = smov [#allocation8]   ;;  %s1443_s22 = int_to_ptr.vmem [resolvable:$true] %s280_s22 }
  0x15   : > { %p1439_p11 = pnand %p1042_p9, %p1713_p1  ;;  %s1445_s24 = sshll.u32 %s1331_s23, 4  ;;  %s297_s24 = int_to_ptr.vmem [resolvable:$true] %s1445_s24 }
  0x16   : > { %s1139_s27 = scalar_lea.hbm %s1704_s1, 1024 }
  0x17   : > { %p1140_p12 = scmp.ne.s32.totalorder %s1704_s1, %s1139_s27  ;;  %p1455_p13 = pneg %p1439_p11 }
  0x18   : > { %p1146_p5 = scmp.lt.u32.totalorder %s1139_s27, %s1704_s1 }
  0x19   : > { %p1142_p0 = pnand %p1455_p13, %p1140_p12 }
  0x1b   : > { %p1143_p3 = pneg %p1142_p0 }
  0x1d   : > { %p1148_p7 = pnand %p1146_p5, %p1143_p3 }
  0x1f   : > { %1151 = shalt.err (!%p1148_p7)
}
  0x20   : > { %s1152_s23 = scalar_lea.vmem %s1432_s19, 1024  ;;  %p1160_p2 = scmp.lt.s32.totalorder %s1432_s19, %s1432_s19 }
  0x21   : > { %p1153_p9 = scmp.ne.s32.totalorder %s1432_s19, %s1152_s23  ;;  %p1161_p6 = scmp.lt.s32.totalorder %s1152_s23, %s1152_s23 }
  0x23   : > { %p1155_p10 = pnand %p1153_p9, %p1455_p13  ;;  %p1162_p12 = por %p1161_p6, %p1160_p2 }
  0x25   : > { %p1156_p1 = pneg %p1155_p10 }
  0x27   : > { %p1163_p0 = pnand %p1162_p12, %p1156_p1 }
  0x29   : > { %1166 = shalt.err (!%p1163_p0)
}
  0x2a   : > { %s1332_s25 = smov 64   ;;  %s1333_s26 = smov 4  }
  0x2b   : > { %1045 = dma.hbm_to_vmem [thread:$0]  (!%p1439_p11), %s1704_s1, 1024, %s1432_s19, [#allocation6], %s1332_s25, %s1332_s25, %s1333_s26  }
  0x2c   : > { %s1167_s21 = scalar_lea.hbm %s1706_s3, 1024 }
  0x2d   : > { %p1168_p1 = scmp.ne.s32.totalorder %s1706_s3, %s1167_s21  ;;  %p1174_p10 = scmp.lt.u32.totalorder %s1167_s21, %s1706_s3 }
  0x2f   : > { %p1170_p2 = pnand %p1168_p1, %p1455_p13 }
  0x31   : > { %p1171_p6 = pneg %p1170_p2 }
  0x33   : > { %p1176_p3 = pnand %p1174_p10, %p1171_p6 }
  0x35   : > { %1179 = shalt.err (!%p1176_p3)
}
  0x36   : > { %s1180_s19 = scalar_lea.vmem %s1443_s22, 1024  ;;  %p1188_p12 = scmp.lt.s32.totalorder %s1443_s22, %s1443_s22 }
  0x37   : > { %p1181_p5 = scmp.ne.s32.totalorder %s1443_s22, %s1180_s19  ;;  %p1189_p0 = scmp.lt.s32.totalorder %s1180_s19, %s1180_s19 }
  0x39   : > { %p1183_p7 = pnand %p1181_p5, %p1455_p13  ;;  %p1190_p1 = por %p1189_p0, %p1188_p12 }
  0x3b   : > { %p1184_p9 = pneg %p1183_p7 }
  0x3d   : > { %p1191_p2 = pnand %p1190_p1, %p1184_p9 }
  0x3f   : > { %1194 = shalt.err (!%p1191_p2)
}
  0x40   : > { %1048 = dma.hbm_to_vmem [thread:$0]  (!%p1439_p11), %s1706_s3, 1024, %s1443_s22, [#allocation6], %s1332_s25, %s1332_s25, %s1333_s26  }
  0x41   : > { %s1195_s28 = scalar_lea.hbm %s1708_s5, 1024 }
  0x42   : > { %p1196_p6 = scmp.ne.s32.totalorder %s1708_s5, %s1195_s28  ;;  %p1202_p5 = scmp.lt.u32.totalorder %s1195_s28, %s1708_s5 }
  0x44   : > { %p1198_p10 = pnand %p1196_p6, %p1455_p13 }
  0x46   : > { %p1199_p3 = pneg %p1198_p10 }
  0x48   : > { %p1204_p7 = pnand %p1202_p5, %p1199_p3 }
  0x4a   : > { %1207 = shalt.err (!%p1204_p7)
}
  0x4b   : > { %s1208_s19 = scalar_lea.vmem %s297_s24, 1024  ;;  %p1216_p1 = scmp.lt.s32.totalorder %s297_s24, %s297_s24 }
  0x4c   : > { %p1209_p9 = scmp.ne.s32.totalorder %s297_s24, %s1208_s19  ;;  %p1217_p2 = scmp.lt.s32.totalorder %s1208_s19, %s1208_s19 }
  0x4e   : > { %p1211_p12 = pnand %p1209_p9, %p1455_p13  ;;  %p1218_p4 = por %p1217_p2, %p1216_p1 }
  0x50   : > { %p1212_p0 = pneg %p1211_p12 }
  0x52   : > { %p1219_p8 = pnand %p1218_p4, %p1212_p0 }
  0x54   : > { %1222 = shalt.err (!%p1219_p8)
}
  0x55   : > { %1051 = dma.hbm_to_vmem [thread:$0]  (!%p1439_p11), %s1708_s5, 1024, %s297_s24, [#allocation9], %s1332_s25, %s1332_s25, %s1333_s26  }
  0x56   : > { %s1528_s14 = sadd.s32 1, %s1327_s12   ;;  %s34_s30 = sadd.s32 1, %s1323_s11 }
  0x57   : > { %s31_s20 = ssub.s32 %s1327_s12, %s1528_s14  ;;  %p41_p8 = scmp.ne.s32.totalorder %s1323_s11, %s1319_s10 }
  0x58   : > { %p32_p4 = scmp.eq.s32.totalorder %s31_s20, 0  ;;  %p42_p13 = scmp.eq.s32.totalorder %s1327_s12, 0 }
  0x59   : > { %p1063_p6 = scmp.lt.s32.totalorder %s1327_s12, 2  ;;  %p1727_p3 = scmp.eq.s32.totalorder %s1409_s13, 1 }
  0x5a   : > { %s1538_s16 = scalar_select %p32_p4, %s1323_s11, %s34_s30  }
  0x5b   : > { %p43_p10 = por %p42_p13, %p41_p8  ;;  %p1542_p5 = por %p1727_p3, %p41_p8 }
  0x5c   : > { %s319_s28 = sand.u32 1, %s1323_s11   ;;  %s899_s29 = sshll.u32 %s1327_s12, 7 }
  0x5d   : > { %s898_s24 = sshll.u32 %s319_s28, 3  ;;  %s1551_s18 = scalar_lea.hbm %s1703_s0, %s899_s29 }
  0x5e   : > { %s323_s21 = scalar_lea.vmem [#allocation2], %s898_s24  ;;  %p1553_p11 = pnand %p1063_p6, %p43_p10 }
  0x5f   : > { %s330_s23 = sshll.u32 %s323_s21, 4  ;;  %s320_s22 = scalar_lea.sflag [#allocation3], %s319_s28  ;;  %s1557_s23 = int_to_ptr.vmem [resolvable:$true] %s330_s23 }
  0x60   : > { %s1223_s9 = scalar_lea.hbm %s1551_s18, 128  ;;  %p1225_p9 = pneg %p1553_p11 }
  0x61   : > { %p1224_p7 = scmp.ne.s32.totalorder %s1551_s18, %s1223_s9  ;;  %s1228_s29 = scalar_lea.hbm %s1703_s0, 256 }
  0x62   : > { %p1229_p1 = scmp.lt.u32.totalorder %s1551_s18, %s1703_s0  ;;  %p1230_p2 = scmp.lt.u32.totalorder %s1228_s29, %s1223_s9 }
  0x63   : > { %p1226_p12 = pnand %p1225_p9, %p1224_p7  ;;  %p1232_p8 = scmp.lt.u32.totalorder %s1223_s9, %s1551_s18 }
  0x64   : > { %p1231_p4 = por %p1230_p2, %p1229_p1 }
  0x65   : > { %p1227_p0 = pneg %p1226_p12 }
  0x66   : > { %p1233_p13 = por %p1232_p8, %p1231_p4 }
  0x68   : > { %p1234_p6 = pnand %p1233_p13, %p1227_p0 }
  0x6a   : > { %1237 = shalt.err (!%p1234_p6)
}
  0x6b   : > { %s1238_s28 = scalar_lea.vmem %s1557_s23, 128  ;;  %s1334_s26 = smov [#allocation2]  }
  0x6c   : > { %p1239_p10 = scmp.ne.s32.totalorder %s1557_s23, %s1238_s28  ;;  %s1243_s21 = sshll.u32 %s1334_s26, 4  ;;  %s1244_s21 = int_to_ptr.vmem [resolvable:$false] %s1243_s21 }
  0x6d   : > { %s1245_s20 = scalar_lea.vmem %s1244_s21, 256  ;;  %p1246_p12 = scmp.lt.s32.totalorder %s1557_s23, %s1244_s21 }
  0x6e   : > { %p1241_p3 = pnand %p1239_p10, %p1225_p9  ;;  %p1247_p1 = scmp.lt.s32.totalorder %s1245_s20, %s1238_s28 }
  0x70   : > { %p1242_p7 = pneg %p1241_p3  ;;  %p1248_p2 = por %p1247_p1, %p1246_p12 }
  0x72   : > { %p1249_p4 = pnand %p1248_p2, %p1242_p7 }
  0x74   : > { %1252 = shalt.err (!%p1249_p4)
}
  0x75   : > { %1055 = dma.hbm_to_vmem [thread:$0]  (!%p1553_p11), %s1551_s18, 128, %s1557_s23, %s320_s22  }
  0x76   : > { %p1730_p0 = scmp.ne.s32.totalorder %s1724_s17, 0 }
  0x77   : > { %s1587_s9 = sand.u32 (!%p1730_p0), 1, %s1319_s10   ;;  %p1731_p9 = scmp.ne.s32.totalorder (!%p1730_p0), %s1721_s15, 0 }
  0x78   : > { %339 = sbr.rel (%p1730_p0) target bundleno = 1196 (0x4ac), region = 56  ;;  %s901_s30 = sshll.u32 (!%p1730_p0), %s1587_s9, 3 }
  0x79   : > { %s342_s29 = scalar_lea.sflag (!%p1730_p0), [#allocation3], %s1587_s9  ;;  %s1593_s24 = scalar_lea.vmem (!%p1730_p0), [#allocation2], %s901_s30 }
  0x7f   : > { %1298 = dma.done.wait (%p1731_p9), %s342_s29, 128  }
  0x80   : > { %1300 = vsyncadd (%p1731_p9), %s342_s29, 4294967168  ;;  %p1732_p11 = scmp.eq.s32.totalorder %s1409_s13, 0 }
  0x82   : > { %1302 = dma.done.wait (%p1732_p11), [#allocation6], 2048   ;;  %p1733_p8 = pmov %p1732_p11 }
  0x84   : > { %1304 = vsyncadd (%p1733_p8), [#allocation6], 4294965248  ;;  %p1734_p13 = pmov %p1733_p8 }
  0x85   : > { %p1735_p6 = pmov %p1733_p8 }
  0x86   : > { %1306 = dma.done.wait (%p1734_p13), [#allocation9], 1024  }
  0x87   : > { %1308 = vsyncadd (%p1735_p6), [#allocation9], 4294966272  ;;  %v1335_v0 = vmov 0.0   ;;  %vm1336_vm0 = vmmov 0   ;;  %v1107_v1 = vld [vmem:[#allocation5] sm:$0xff]   ;;  %v1108_v2 = vld [vmem:[#allocation5 + $0x8] sm:$0xff]  }
  0x88   : > { %966 = vmatprep.subr.bf16.mxu0 %v1335_v0  ;;  %982 = vmatprep.mubr.msk.bf16.mxu0 %vm1336_vm0, %v1335_v0  ;;  %v1109_v3 = vld [vmem:[#allocation5 + $0x10] sm:$0xff]   ;;  %v1115_v4 = vld [vmem:[#allocation7] sm:$0xff]   ;;  %v1110_v5 = vld [vmem:[#allocation5 + $0x18] sm:$0xff]   ;;  %s936_s20 = sshll.u32 %s1409_s13, 7  ;;  %s391_s29 = scalar_lea.vmem [#allocation10], %s901_s30 }
  0x89   : > { %986 = vmatprep.subr.bf16.mxu1 %v1335_v0  ;;  %1002 = vmatprep.mubr.msk.bf16.mxu1 %vm1336_vm0, %v1335_v0  ;;  %v1116_v6 = vld [vmem:[#allocation7 + $0x8] sm:$0xff]   ;;  %v1111_v7 = vld [vmem:[#allocation5 + $0x20] sm:$0xff]   ;;  %v1117_v8 = vld [vmem:[#allocation7 + $0x10] sm:$0xff]   ;;  %s1736_s18 = sld [smem:[#allocation17_spill]]  ;;  %s780_s19 = scalar_lea.sflag [#allocation4], %s1587_s9 }
  0x8a   : > { %967 = vmatpush3.bf16.msra.mxu0 %v1107_v1  ;;  %987 = vmatpush3.bf16.msra.mxu1 %v1115_v4  ;;  %v1112_v9 = vld [vmem:[#allocation5 + $0x28] sm:$0xff]   ;;  %v1113_v10 = vld [vmem:[#allocation5 + $0x30] sm:$0xff]   ;;  %v1114_v11 = vld [vmem:[#allocation5 + $0x38] sm:$0xff]   ;;  %s1337_s13 = smov [#allocation10]  }
  0x8b   : > { %968 = vmatprep.subr.bf16.mxu0 %v1335_v0  ;;  %988 = vmatprep.subr.bf16.mxu1 %v1335_v0  ;;  %v393_v12 = vld [vmem:[%s1593_s24] sm:$0xff]  ;;  %v1119_v15 = vld [vmem:[#allocation7 + $0x20] sm:$0xff]   ;;  %v1120_v16 = vld [vmem:[#allocation7 + $0x28] sm:$0xff]   ;;  %s793_s24 = sshll.u32 %s391_s29, 4  ;;  %s1257_s30 = sshll.u32 %s1337_s13, 4  ;;  %s1661_s24 = int_to_ptr.vmem [resolvable:$true] %s793_s24  ;;  %s1258_s30 = int_to_ptr.vmem [resolvable:$false] %s1257_s30 }
  0x8c   : > { %v394_v13 = vpack.c.bf16 %v393_v12, %v393_v12  ;;  %v1118_v14 = vld [vmem:[#allocation7 + $0x18] sm:$0xff]   ;;  %v1121_v17 = vld [vmem:[#allocation7 + $0x30] sm:$0xff]   ;;  %v1123_v19 = vld [vmem:[#allocation8] sm:$0xff]   ;;  %s1253_s22 = scalar_lea.vmem %s1661_s24, 128  ;;  %s1259_s25 = scalar_lea.vmem %s1258_s30, 256 }
  0x8d   : > { %v1122_v18 = vld [vmem:[#allocation7 + $0x38] sm:$0xff]   ;;  %v1124_v20 = vld [vmem:[#allocation8 + $0x8] sm:$0xff]   ;;  %v906_v21 = vld [vmem:[%s1705_s2] ss:$0 sm:$0xff]  ;;  %p1254_p10 = scmp.ne.s32.totalorder %s1661_s24, %s1253_s22  ;;  %p1260_p12 = scmp.lt.s32.totalorder %s1661_s24, %s1258_s30 }
  0x8e   : > { %969 = vmatpush3.bf16.msra.mxu0 %v1108_v2  ;;  %989 = vmatpush3.bf16.msra.mxu1 %v1116_v6  ;;  %v1125_v33 = vld [vmem:[#allocation8 + $0x10] sm:$0xff]   ;;  %v1126_v34 = vld [vmem:[#allocation8 + $0x18] sm:$0xff]   ;;  %v1127_v35 = vld [vmem:[#allocation8 + $0x20] sm:$0xff]   ;;  %p1261_p1 = scmp.lt.s32.totalorder %s1259_s25, %s1253_s22 }
  0x8f   : > { %970 = vmatprep.subr.bf16.mxu0 %v1335_v0  ;;  %990 = vmatprep.subr.bf16.mxu1 %v1335_v0  ;;  %v1128_v36 = vld [vmem:[#allocation8 + $0x28] sm:$0xff]   ;;  %v1129_v37 = vld [vmem:[#allocation8 + $0x30] sm:$0xff]   ;;  %v1130_v38 = vld [vmem:[#allocation8 + $0x38] sm:$0xff]   ;;  %s1659_s23 = scalar_lea.hbm %s1736_s18, %s936_s20  ;;  %p1255_p3 = pnand %p1254_p10, %p1542_p5 }
  0x90   : > { %v915_v39 = vld [vmem:[%s1707_s4] ss:$0 sm:$0xff]  ;;  %p1262_p2 = por %p1261_p1, %p1260_p12 }
  0x91   : > { %v924_v52 = vld [vmem:[%s1709_s6] ss:$0 sm:$0xff]  ;;  %p1256_p7 = pneg %p1255_p3 }
  0x92   : > { %971 = vmatpush3.bf16.msra.mxu0 %v1109_v3  ;;  %991 = vmatpush3.bf16.msra.mxu1 %v1117_v8 }
  0x93   : > { %972 = vmatprep.subr.bf16.mxu0 %v1335_v0  ;;  %992 = vmatprep.subr.bf16.mxu1 %v1335_v0  ;;  %p1263_p4 = pnand %p1262_p2, %p1256_p7 }
  0x96   : > { %973 = vmatpush3.bf16.msra.mxu0 %v1110_v5  ;;  %993 = vmatpush3.bf16.msra.mxu1 %v1118_v14 }
  0x97   : > { %974 = vmatprep.subr.bf16.mxu0 %v1335_v0  ;;  %994 = vmatprep.subr.bf16.mxu1 %v1335_v0 }
  0x9a   : > { %975 = vmatpush3.bf16.msra.mxu0 %v1111_v7  ;;  %995 = vmatpush3.bf16.msra.mxu1 %v1119_v15 }
  0x9b   : > { %976 = vmatprep.subr.bf16.mxu0 %v1335_v0  ;;  %996 = vmatprep.subr.bf16.mxu1 %v1335_v0 }
  0x9e   : > { %977 = vmatpush3.bf16.msra.mxu0 %v1112_v9  ;;  %997 = vmatpush3.bf16.msra.mxu1 %v1120_v16 }
  0x9f   : > { %978 = vmatprep.subr.bf16.mxu0 %v1335_v0  ;;  %998 = vmatprep.subr.bf16.mxu1 %v1335_v0 }
  0xa2   : > { %979 = vmatpush3.bf16.msra.mxu0 %v1113_v10  ;;  %999 = vmatpush3.bf16.msra.mxu1 %v1121_v17 }
  0xa3   : > { %980 = vmatprep.subr.bf16.mxu0 %v1335_v0  ;;  %1000 = vmatprep.subr.bf16.mxu1 %v1335_v0 }
  0xa6   : > { %981 = vmatpush3.bf16.msra.mxu0 %v1114_v11  ;;  %1001 = vmatpush3.bf16.msra.mxu1 %v1122_v18  ;;  %v933_v11 = vld [vmem:[%s1710_s7] ss:$0 sm:$0xff] }
  0xa7   : > { %1006 = vmatprep.subr.bf16.mxu0 %v1335_v0 }
  0xa9   : > { %983 = vmatmul.mubr.bf16.vlgmr.msra.gmra.mrb[0].mxu0 %v394_v13  ;;  %v934_v13 = vld [vmem:[%s1711_s8] ss:$0 sm:$0xff] }
  0xaa   : > { %1022 = vmatprep.mubr.msk.bf16.mxu0 %vm1336_vm0, %v1335_v0  ;;  %1007 = vmatpush3.bf16.msra.mxu0 %v1123_v19 }
  0xab   : > { %1008 = vmatprep.subr.bf16.mxu0 %v1335_v0 }
  0xae   : > { %1009 = vmatpush3.bf16.msra.mxu0 %v1124_v20 }
  0xaf   : > { %1010 = vmatprep.subr.bf16.mxu0 %v1335_v0 }
  0xb2   : > { %1011 = vmatpush3.bf16.msra.mxu0 %v1125_v33 }
  0xb3   : > { %1012 = vmatprep.subr.bf16.mxu0 %v1335_v0 }
  0xb6   : > { %1013 = vmatpush3.bf16.msra.mxu0 %v1126_v34 }
  0xb7   : > { %1014 = vmatprep.subr.bf16.mxu0 %v1335_v0 }
  0xba   : > { %1015 = vmatpush3.bf16.msra.mxu0 %v1127_v35 }
  0xbb   : > { %1016 = vmatprep.subr.bf16.mxu0 %v1335_v0 }
  0xbe   : > { %1017 = vmatpush3.bf16.msra.mxu0 %v1128_v36 }
  0xbf   : > { %1018 = vmatprep.subr.bf16.mxu0 %v1335_v0 }
  0xc2   : > { %1019 = vmatpush3.bf16.msra.mxu0 %v1129_v37 }
  0xc3   : > { %1020 = vmatprep.subr.bf16.mxu0 %v1335_v0  ;;  %v749_v0 = vlaneseq }
  0xc5   : > { %v750_v1 = vand.u32 127, %v749_v0 }
  0xc6   : > { %1021 = vmatpush3.bf16.msra.mxu0 %v1130_v38 }
  0xc7   : > { %vm751_vm1 = vcmp.lt.s32.totalorder %v750_v1, 32 }
 0x17c   : > { %v500_v22 = vpop.f32.mrb[0].mxu0 }
 0x17d   : > { %v501_v23 = vadd.f32 %v906_v21, %v500_v22  ;;  %v984_v24 = vpop.f32.mrb[1].mxu0 }
 0x17e   : > { %v503_v25 = vpop.f32.mrb[2].mxu0 }
 0x17f   : > { %v507_v26 = vmul.f32 0.70710677, %v501_v23  ;;  %v985_v27 = vpop.f32.mrb[3].mxu0  ;;  %v506_v29 = vmul.f32 0.5, %v501_v23 }
 0x181   : > { %1131 = verf.f32 %v507_v26 }
 0x18b   : > { %v1132_v28 = vpop.eup %1131 }
 0x18c   : > { %v509_v30 = vadd.f32 1.0, %v1132_v28 }
 0x18e   : > { %v510_v31 = vmul.f32 %v509_v30, %v506_v29 }
 0x190   : > { %v511_v32 = vpack.c.bf16 %v510_v31, %v510_v31 }
 0x192   : > { %1003 = vmatmul.mubr.bf16.vlgmr.msra.gmra.mrb[0].mxu1 %v511_v32 }
 0x265   : > { %v617_v40 = vpop.f32.mrb[0].mxu1 }
 0x266   : > { %v618_v41 = vadd.f32 %v915_v39, %v617_v40  ;;  %v1004_v42 = vpop.f32.mrb[1].mxu1 }
 0x267   : > { %v620_v43 = vpop.f32.mrb[2].mxu1 }
 0x268   : > { %v624_v44 = vmul.f32 0.70710677, %v618_v41  ;;  %v1005_v45 = vpop.f32.mrb[3].mxu1  ;;  %v623_v47 = vmul.f32 0.5, %v618_v41 }
 0x26a   : > { %1133 = verf.f32 %v624_v44 }
 0x274   : > { %v1134_v46 = vpop.eup %1133 }
 0x275   : > { %v626_v48 = vadd.f32 1.0, %v1134_v46 }
 0x277   : > { %v627_v49 = vmul.f32 %v626_v48, %v623_v47 }
 0x279   : > { %v628_v50 = vadd.f32 %v627_v49, %v510_v31 }
 0x27b   : > { %v629_v51 = vpack.c.bf16 %v628_v50, %v628_v50 }
 0x27d   : > { %1023 = vmatmul.mubr.bf16.vlgmr.msra.gmra.mrb[4].mxu0 %v629_v51 }
 0x350   : > { %v735_v53 = vpop.f32.mrb[4].mxu0 }
 0x351   : > { %v736_v54 = vadd.f32 %v924_v52, %v735_v53  ;;  %v1024_v55 = vpop.f32.mrb[5].mxu0 }
 0x352   : > { %v738_v56 = vpop.f32.mrb[6].mxu0 }
 0x353   : > { %v742_v57 = vmul.f32 0.70710677, %v736_v54  ;;  %v1025_v58 = vpop.f32.mrb[7].mxu0  ;;  %v741_v60 = vmul.f32 0.5, %v736_v54 }
 0x355   : > { %1135 = verf.f32 %v742_v57 }
 0x35f   : > { %v1136_v59 = vpop.eup %1135 }
 0x360   : > { %v744_v61 = vadd.f32 1.0, %v1136_v59 }
 0x362   : > { %v745_v62 = vmul.f32 %v744_v61, %v741_v60 }
 0x364   : > { %v746_v63 = vadd.f32 %v745_v62, %v628_v50 }
 0x366   : > { %752 = vadd.xlane.f32.xlu0 %v746_v63 }
 0x3f3   : > { %v753_v2 = vpop.xlane.xlu0 %752 }
 0x3f4   : > { %v754_v3 = vmul.f32 0.03125, %v753_v2 }
 0x3f6   : > { %v755_v4 = vsub.f32 %v746_v63, %v754_v3 }
 0x3f8   : > { %v756_v5 = vsel %vm751_vm1, %v755_v4, 0.0 }
 0x3f9   : > { %v757_v6 = vmul.f32 %v756_v5, %v756_v5 }
 0x3fb   : > { %758 = vadd.xlane.f32.xlu0 %v757_v6 }
 0x488   : > { %v759_v7 = vpop.xlane.xlu0 %758 }
 0x489   : > { %v760_v8 = vmul.f32 0.03125, %v759_v7 }
 0x48b   : > { %v761_v9 = vadd.f32 1e-05, %v760_v8 }
 0x48d   : > { %1137 = vrsqrt.f32 %v761_v9 }
 0x497   : > { %v1138_v10 = vpop.eup %1137 }
 0x498   : > { %v763_v12 = vmul.f32 %v1138_v10, %v756_v5 }
 0x49a   : > { %v770_v14 = vmul.f32 %v933_v11, %v763_v12 }
 0x49c   : > { %v777_v15 = vadd.f32 %v934_v13, %v770_v14 }
 0x49e   : > { %778 = vst [vmem:[%s391_s29] sm:$0xff] %v777_v15 }
 0x49f   : > { %1266 = shalt.err (!%p1263_p4)
}
 0x4a0   : > { %s1267_s9 = scalar_lea.hbm %s1659_s23, 128  ;;  %s1271_s21 = scalar_lea.hbm %s1736_s18, 256 }
 0x4a1   : > { %p1268_p0 = scmp.ne.s32.totalorder %s1659_s23, %s1267_s9  ;;  %p1272_p8 = scmp.lt.u32.totalorder %s1659_s23, %s1736_s18 }
 0x4a2   : > { %p1273_p13 = scmp.lt.u32.totalorder %s1271_s21, %s1267_s9  ;;  %p1275_p10 = scmp.lt.u32.totalorder %s1267_s9, %s1659_s23 }
 0x4a3   : > { %p1269_p9 = pnand %p1268_p0, %p1542_p5 }
 0x4a4   : > { %p1274_p6 = por %p1273_p13, %p1272_p8 }
 0x4a5   : > { %p1270_p11 = pneg %p1269_p9 }
 0x4a6   : > { %p1276_p3 = por %p1275_p10, %p1274_p6 }
 0x4a8   : > { %p1277_p7 = pnand %p1276_p3, %p1270_p11 }
 0x4aa   : > { %1280 = shalt.err (!%p1277_p7)
}
 0x4ab   : > { %1040 = dma.vmem_to_hbm [thread:$0]  (%p1542_p5), %s1661_s24, 128, %s1659_s23, %s780_s19  }
 0x4ac PF: > { %s1737_s15 = sld [smem:[#allocation15_spill]]  ;;  %s1738_s17 = sld [smem:[#allocation16_spill]] }
 0x4ad   : > { %p1740_p1 = scmp.ge.s32.totalorder %s1327_s12, 2 }
 0x4b2   : > { %s805_s22 = sand.u32 1, %s1737_s15   ;;  %p1739_p12 = scmp.ne.s32.totalorder %s1738_s17, 0 }
 0x4b3   : > { %s806_s13 = scalar_lea.sflag [#allocation4], %s805_s22 }
 0x4b4   : > { %p1057_p2 = pnand %p1740_p1, %p1739_p12 }
 0x4b6   : > { %1310 = dma.done.wait (!%p1057_p2), %s806_s13, 128  }
 0x4b7   : > { %1312 = vsyncadd (!%p1057_p2), %s806_s13, 4294967168  ;;  %p24_p4 = scmp.ge.s32.totalorder %s1528_s14, 4   ;;  %s1741_s30 = smov %s1319_s10 }
 0x4b8   : > { %s1742_s10 = smov %s1323_s11  ;;  %s1743_s11 = smov %s1538_s16 }
 0x4b9   : > { %s1744_s12 = smov %s1528_s14  ;;  %26 = sbr.rel (!%p24_p4) target bundleno = 9 (0x9), region = 113 }
 0x4c0   :  { %811 = vsyncpa [#allocation3], 1 }
 0x4c1   :  { %813 = vsyncpa [#allocation3 + $0x1], 1 }
 0x4c2   :  { %814 = vsyncpa [#allocation6], 1 }
 0x4c3   :  { %815 = vsyncpa [#allocation9], 1 }
 0x4c4   :  { %816 = vsyncpa [#allocation4], 1 }
 0x4c5   :  { %818 = vsyncpa [#allocation4 + $0x1], 1 }

</bundles_post_ra>
